<compile_context>
chip_gen: v7x
topology: tpu7x:2x2x1
jax: 0.10.0
libtpu: 0.0.40
codegen_flags: <defaults>
</compile_context>

<pallas_src>
import jax
import jax.numpy as jnp
from jax.experimental import pallas as pl
from jax.experimental.pallas import tpu as pltpu


def _round_up(a: int, b: int) -> int:
    return ((a + b - 1) // b) * b


def _pick_group(bc: int, v: int, l: int, itemsize: int) -> int:
    """Pick G (graphs per grid step): divisor of bc, sized for pipelining/VMEM."""
    r_v = _round_up(v, 8)        # sublane padding of the (V, L) tile
    r_l = _round_up(l, 128)      # lane padding of the (V, L) tile
    pad_per_g = r_v * r_l * itemsize          # padded VMEM bytes per graph per buffer
    hbm_per_g = 2 * v * l * itemsize          # real HBM bytes per graph (in + out)

    # Keep the 4 big double-buffered tiles (in x2 + out x2) <= ~32 MiB padded
    # so the same tiling fits v7x's 64 MiB/TC as well as v5e/v6e's 128 MiB.
    g_vmem_cap = max(1, (8 * 1024 * 1024) // max(pad_per_g, 1))
    # Target roughly ~2 MiB of real HBM traffic per grid step.
    g_hbm_tgt = max(1, (2 * 1024 * 1024) // max(hbm_per_g, 1))
    # Guarantee >= 4 grid steps when bc allows (>= 2 per v7x TensorCore).
    g_steps_cap = max(1, bc // 4)

    g_max = max(1, min(g_vmem_cap, g_hbm_tgt, g_steps_cap, bc))
    # Largest divisor of bc not exceeding g_max  =>  no padding along B*C.
    g = 1
    for d in range(1, g_max + 1):
        if bc % d == 0:
            g = d
    return g


def _nconv_kernel(a_ref, x_ref, o_ref):
    # a_ref: (V, V) adjacency; constant index_map => stays VMEM-resident.
    # x_ref: (G, V, L) native-layout block of x.reshape(B*C, V, L).
    # o_ref: (G, V, L) native-layout output block.
    # out[g, w, l] = sum_v A[v, w] * x[g, v, l] = (A^T @ x[g])[w, l]
    a_t = a_ref[...].T  # one small in-VMEM transpose per grid step (hoisted out of the loop)
    for g in range(x_ref.shape[0]):  # static unroll: G independent (V,V)@(V,L) MXU matmuls
        o_ref[g] = jnp.dot(
            a_t, x_ref[g], preferred_element_type=jnp.float32
        ).astype(o_ref.dtype)


def nconv(x, A):
    """
    Args:
        x: [B, C, V, L] node features
        A: [V, V] adjacency matrix
    Returns:
        [B, C, V, L] graph-convolved features (einsum 'ncvl,vw->ncwl')
    """
    B, C, V, L = x.shape
    assert A.shape == (V, V)
    BC = B * C
    itemsize = jnp.dtype(x.dtype).itemsize

    # Free (contiguous) reshape: no HBM relayout, kernel works on native layout.
    x_r = x.reshape(BC, V, L)

    G = _pick_group(BC, V, L, itemsize)
    grid = (BC // G,)

    # VMEM budget from actual (padded) buffer sizes: in/out tiles double-buffered
    # + the small resident A block, plus headroom for compiler-internal scratch.
    r_v = _round_up(V, 8)
    r_l = _round_up(L, 128)
    tile_pad_bytes = G * r_v * r_l * itemsize
    a_pad_bytes = r_v * _round_up(V, 128) * jnp.dtype(A.dtype).itemsize
    vmem_needed = 4 * tile_pad_bytes + 2 * a_pad_bytes
    vmem_limit = int(min(vmem_needed + 8 * 1024 * 1024, 60 * 1024 * 1024))

    # Exact traffic: B*C divides evenly into groups, so no padded rows/columns.
    cost = pl.CostEstimate(
        flops=2 * BC * V * V * L,
        transcendentals=0,
        bytes_accessed=(2 * BC * V * L + V * V) * itemsize,
    )

    out = pl.pallas_call(
        _nconv_kernel,
        out_shape=jax.ShapeDtypeStruct((BC, V, L), x.dtype),
        grid=grid,
        in_specs=[
            pl.BlockSpec((V, V), lambda i: (0, 0)),      # A: resident across the grid
            pl.BlockSpec((G, V, L), lambda i: (i, 0, 0)),  # native x block (contiguous HBM)
        ],
        out_specs=pl.BlockSpec((G, V, L), lambda i: (i, 0, 0)),
        compiler_params=pltpu.CompilerParams(
            dimension_semantics=("parallel",),   # independent groups; megacore-shardable
            vmem_limit_bytes=vmem_limit,
        ),
        cost_estimate=cost,
    )(A, x_r)

    return out.reshape(B, C, V, L)  # free reshape back to [B, C, V, L]


if __name__ == "__main__":
    key = jax.random.PRNGKey(0)
    kx, ka, kx2, ka2 = jax.random.split(key, 4)

    nconv_j = jax.jit(nconv)

    # Primary check (shapes consistent with the module: batch=2, channels=4,
    # nodes=16, time=16).
    B, C, V, L = 2, 4, 16, 16
    x = jax.random.normal(kx, (B, C, V, L), dtype=jnp.float32)
    A = jax.random.normal(ka, (V, V), dtype=jnp.float32)
    out = jax.block_until_ready(nconv_j(x, A))
    ref = jnp.einsum("ncvl,vw->ncwl", x, A)
    assert out.shape == (B, C, V, L)
    assert jnp.allclose(out, ref, atol=1e-4, rtol=1e-4), "mismatch vs reference (case 1)"

    # Second check: different V, ragged L (exercises lane-masked tiles + grid of 4).
    B2, C2, V2, L2 = 4, 8, 32, 13
    x2 = jax.random.normal(kx2, (B2, C2, V2, L2), dtype=jnp.float32)
    A2 = jax.random.normal(ka2, (V2, V2), dtype=jnp.float32)
    out2 = jax.block_until_ready(nconv_j(x2, A2))
    ref2 = jnp.einsum("ncvl,vw->ncwl", x2, A2)
    assert out2.shape == (B2, C2, V2, L2)
    assert jnp.allclose(out2, ref2, atol=1e-3, rtol=1e-3), "mismatch vs reference (case 2)"

    print("KERNEL_OK")
</pallas_src>

<mosaic_0001>
module attributes {stable_mosaic.version = 11 : i64} {
  func.func @_nconv_kernel(%arg0: i32, %arg1: memref<16x16xf32, #tpu.memory_space<vmem>>, %arg2: memref<2x16x16xf32, #tpu.memory_space<vmem>>, %arg3: memref<2x16x16xf32, #tpu.memory_space<vmem>>) attributes {dimension_semantics = [#tpu.dimension_semantics<parallel>], iteration_bounds = array<i64: 4>, scalar_prefetch = 0 : i64, scratch_operands = 0 : i64, tpu.core_type = #tpu.core_type<tc>, window_params = [{pipeline_mode = #tpu.pipeline_mode<synchronous>, transform_indices = @transform_0, window_bounds = array<i64: 16, 16>}, {transform_indices = @transform_1, window_bounds = array<i64: 2, 16, 16>}, {transform_indices = @transform_2, window_bounds = array<i64: 2, 16, 16>}]} {
    %c0 = arith.constant 0 : index
    %c0_0 = arith.constant 0 : index
    %0 = vector.load %arg1[%c0, %c0_0] : memref<16x16xf32, #tpu.memory_space<vmem>>, vector<16x16xf32>
    %1 = tpu.transpose %0, [1, 0] : vector<16x16xf32> -> vector<16x16xf32>
    %c0_1 = arith.constant 0 : index
    %c0_2 = arith.constant 0 : index
    %c0_3 = arith.constant 0 : index
    %2 = vector.load %arg2[%c0_1, %c0_2, %c0_3] : memref<2x16x16xf32, #tpu.memory_space<vmem>>, vector<1x16x16xf32>
    %3 = vector.shape_cast %2 : vector<1x16x16xf32> to vector<16x16xf32>
    %cst = arith.constant dense<0.000000e+00> : vector<16x16xf32>
    %4 = tpu.matmul %1, %3, %cst {dimension_numbers = #tpu.dot_dimension_numbers<[1], [0], [0], [1], [0, 0, 1, 1], [], []>} : vector<16x16xf32>, vector<16x16xf32>, vector<16x16xf32> -> vector<16x16xf32>
    %c0_4 = arith.constant 0 : index
    %c0_5 = arith.constant 0 : index
    %c0_6 = arith.constant 0 : index
    %5 = vector.load %arg3[%c0_4, %c0_5, %c0_6] : memref<2x16x16xf32, #tpu.memory_space<vmem>>, vector<1x16x16xf32>
    %6 = vector.shape_cast %5 : vector<1x16x16xf32> to vector<16x16xf32>
    %7 = vector.shape_cast %4 : vector<16x16xf32> to vector<1x16x16xf32>
    tpu.vector_store %arg3[%c0_4, %c0_5, %c0_6], %7 {strides = array<i32>} : memref<2x16x16xf32, #tpu.memory_space<vmem>>, vector<1x16x16xf32>,
    %c1 = arith.constant 1 : index
    %c0_7 = arith.constant 0 : index
    %c0_8 = arith.constant 0 : index
    %8 = vector.load %arg2[%c1, %c0_7, %c0_8] : memref<2x16x16xf32, #tpu.memory_space<vmem>>, vector<1x16x16xf32>
    %9 = vector.shape_cast %8 : vector<1x16x16xf32> to vector<16x16xf32>
    %cst_9 = arith.constant dense<0.000000e+00> : vector<16x16xf32>
    %10 = tpu.matmul %1, %9, %cst_9 {dimension_numbers = #tpu.dot_dimension_numbers<[1], [0], [0], [1], [0, 0, 1, 1], [], []>} : vector<16x16xf32>, vector<16x16xf32>, vector<16x16xf32> -> vector<16x16xf32>
    %c1_10 = arith.constant 1 : index
    %c0_11 = arith.constant 0 : index
    %c0_12 = arith.constant 0 : index
    %11 = vector.load %arg3[%c1_10, %c0_11, %c0_12] : memref<2x16x16xf32, #tpu.memory_space<vmem>>, vector<1x16x16xf32>
    %12 = vector.shape_cast %11 : vector<1x16x16xf32> to vector<16x16xf32>
    %13 = vector.shape_cast %10 : vector<16x16xf32> to vector<1x16x16xf32>
    tpu.vector_store %arg3[%c1_10, %c0_11, %c0_12], %13 {strides = array<i32>} : memref<2x16x16xf32, #tpu.memory_space<vmem>>, vector<1x16x16xf32>,
    return
  }
  func.func @transform_0(%arg0: i32) -> (i32, i32) {
    %c0_i32 = arith.constant 0 : i32
    %c0_i32_0 = arith.constant 0 : i32
    %c0_i32_1 = arith.constant 0 : i32
    return %c0_i32, %c0_i32_0 : i32, i32
  }
  func.func @transform_1(%arg0: i32) -> (i32, i32, i32) {
    %c0_i32 = arith.constant 0 : i32
    %c0_i32_0 = arith.constant 0 : i32
    %c0_i32_1 = arith.constant 0 : i32
    return %arg0, %c0_i32, %c0_i32_0 : i32, i32, i32
  }
  func.func @transform_2(%arg0: i32) -> (i32, i32, i32) {
    %c0_i32 = arith.constant 0 : i32
    %c0_i32_0 = arith.constant 0 : i32
    %c0_i32_1 = arith.constant 0 : i32
    return %arg0, %c0_i32, %c0_i32_0 : i32, i32, i32
  }
}

</mosaic_0001>

<bundles_post_ra>
// kernel: nconv.1
= control target key start
LH: loop header
LB: loop body
LE: loop exit
PB: predicated region body
PF: predicated region fallthrough
CT: control target
= control target key end

     0   :  { %7 = vsyncpa [#allocation3], 0  ;;  %s961_s0 = inlined_call_operand.hbm [shape: f32[16,16], index: 0, kind: input, shape index: {}]   ;;  %s962_s1 = inlined_call_operand.hbm [shape: f32[8,16,16], index: 1, kind: input, shape index: {}]   ;;  %s963_s2 = inlined_call_operand.hbm [shape: f32[8,16,16], index: 2, kind: output, shape index: {}]  }
   0x1   :  { %8 = vsyncpa [#allocation6], 0 }
   0x2   :  { %10 = vsyncpa [#allocation6 + $0x1], 0 }
   0x3   :  { %11 = vsyncpa [#allocation4], 0 }
   0x4   :  { %13 = vsyncpa [#allocation4 + $0x1], 0  ;;  %s755_s9 = smov 0   ;;  %s757_s10 = smov 0  }
   0x5   :  { %s759_s11 = smov 0   ;;  %s761_s12 = smov 0  }
   0x6 LB: > { %s776_s13 = sadd.s32 4294967295, %s731_s12   ;;  %s481_s14 = sadd.s32 4294967294, %s731_s12   ;;  %s731_s12 = sphi %s761_s12, %s982_s12   ;;  %s727_s11 = sphi %s759_s11, %s981_s11   ;;  %s723_s10 = sphi %s757_s10, %s980_s10   ;;  %s719_s9 = sphi %s755_s9, %s979_s9  }
   0x7   : > { %p60_p0 = scmp.ne.s32.totalorder %s723_s10, %s719_s9  ;;  %p964_p1 = scmp.eq.s32.totalorder %s776_s13, 0 }
   0x8   : > { %p90_p3 = scmp.eq.s32.totalorder %s481_s14, 3  ;;  %p482_p5 = scmp.ge.s32.totalorder %s731_s12, 1 }
   0x9   : > { %p785_p4 = por %p964_p1, %p60_p0  ;;  %p97_p7 = scmp.lt.s32.totalorder %s731_s12, 5 }
   0xa   : > { %p790_p6 = por %p90_p3, %p60_p0  ;;  %s733_s18 = smov [#allocation2]  }
   0xb   : > { %s967_s15 = scalar_select %p785_p4, 1, 0 }
   0xc   : > { %s968_s16 = scalar_select %p790_p6, 1, 0 }
   0xd   : > { %p795_p8 = pnand %p482_p5, %p97_p7  ;;  %s109_s19 = sshll.u32 %s733_s18, 4  ;;  %s110_s19 = int_to_ptr.vmem [resolvable:$true] %s109_s19 }
   0xe   : > { %s808_s21 = sadd.s32 1, %s731_s12   ;;  %s47_s22 = sadd.s32 1, %s727_s11 }
   0xf   : > { %s969_s17 = scalar_select %p795_p8, 1, 0 }
  0x10   : > { %p549_p9 = pneg %p795_p8  ;;  %s44_s23 = ssub.s32 %s731_s12, %s808_s21 }
  0x11   : > { %s603_s26 = scalar_lea.hbm %s961_s0, 256 }
  0x12   : > { %p803_p10 = pnand %p549_p9, %p964_p1  ;;  %p604_p11 = scmp.ne.s32.totalorder %s961_s0, %s603_s26 }
  0x13   : > { %p610_p3 = scmp.lt.u32.totalorder %s603_s26, %s961_s0 }
  0x14   : > { %p605_p12 = pneg %p803_p10 }
  0x16   : > { %p606_p13 = pnand %p605_p12, %p604_p11 }
  0x18   : > { %p607_p0 = pneg %p606_p13 }
  0x1a   : > { %p612_p5 = pnand %p610_p3, %p607_p0 }
  0x1c   : > { %615 = shalt.err (!%p612_p5)
}
  0x1d   : > { %s616_s3 = scalar_lea.vmem %s110_s19, 256  ;;  %p624_p2 = scmp.lt.s32.totalorder %s110_s19, %s110_s19 }
  0x1e   : > { %p617_p7 = scmp.ne.s32.totalorder %s110_s19, %s616_s3  ;;  %p625_p6 = scmp.lt.s32.totalorder %s616_s3, %s616_s3 }
  0x20   : > { %p619_p9 = pnand %p617_p7, %p605_p12  ;;  %p626_p4 = por %p625_p6, %p624_p2 }
  0x22   : > { %p620_p1 = pneg %p619_p9 }
  0x24   : > { %p627_p8 = pnand %p626_p4, %p620_p1 }
  0x26   : > { %630 = shalt.err (!%p627_p8)
}
  0x27   : > { %s734_s4 = smov 128   ;;  %s735_s5 = smov 8  }
  0x28   : > { %552 = dma.hbm_to_vmem [thread:$0]  (!%p803_p10), %s961_s0, 256, %s110_s19, [#allocation3], %s734_s4, %s734_s4, %s735_s5  }
  0x29   : > { %p45_p1 = scmp.eq.s32.totalorder %s44_s23, 0  ;;  %p54_p2 = scmp.ne.s32.totalorder %s727_s11, %s723_s10 }
  0x2a   : > { %p55_p4 = scmp.eq.s32.totalorder %s731_s12, 0  ;;  %p562_p6 = scmp.lt.s32.totalorder %s731_s12, 4 }
  0x2b   : > { %s837_s8 = scalar_select %p45_p1, %s727_s11, %s47_s22  }
  0x2c   : > { %p56_p8 = por %p55_p4, %p54_p2  ;;  %p971_p11 = scmp.eq.s32.totalorder %s776_s13, 3 }
  0x2d   : > { %s123_s18 = sand.u32 1, %s727_s11   ;;  %s508_s20 = sshll.u32 %s731_s12, 9 }
  0x2e   : > { %p841_p12 = por %p971_p11, %p54_p2  ;;  %s485_s24 = sshll.u32 %s123_s18, 5 }
  0x2f   : > { %s850_s27 = scalar_lea.hbm %s962_s1, %s508_s20  ;;  %s127_s19 = scalar_lea.vmem [#allocation5], %s485_s24 }
  0x30   : > { %s135_s22 = sshll.u32 %s127_s19, 4  ;;  %p852_p10 = pnand %p562_p6, %p56_p8  ;;  %s856_s22 = int_to_ptr.vmem [resolvable:$true] %s135_s22 }
  0x31   : > { %s858_s28 = scalar_lea.sflag [#allocation6], %s123_s18  ;;  %s631_s29 = scalar_lea.hbm %s850_s27, 512 }
  0x32   : > { %p632_p13 = scmp.ne.s32.totalorder %s850_s27, %s631_s29  ;;  %p633_p0 = pneg %p852_p10 }
  0x33   : > { %s636_s6 = scalar_lea.hbm %s962_s1, 2048  ;;  %p637_p7 = scmp.lt.u32.totalorder %s850_s27, %s962_s1 }
  0x34   : > { %p634_p3 = pnand %p633_p0, %p632_p13  ;;  %p638_p9 = scmp.lt.u32.totalorder %s636_s6, %s631_s29 }
  0x35   : > { %p640_p2 = scmp.lt.u32.totalorder %s631_s29, %s850_s27 }
  0x36   : > { %p635_p5 = pneg %p634_p3  ;;  %p639_p1 = por %p638_p9, %p637_p7 }
  0x38   : > { %p641_p4 = por %p640_p2, %p639_p1 }
  0x3a   : > { %p642_p6 = pnand %p641_p4, %p635_p5 }
  0x3c   : > { %645 = shalt.err (!%p642_p6)
}
  0x3d   : > { %s646_s18 = scalar_lea.vmem %s856_s22, 512  ;;  %s736_s24 = smov [#allocation5]  }
  0x3e   : > { %p647_p8 = scmp.ne.s32.totalorder %s856_s22, %s646_s18  ;;  %s651_s25 = sshll.u32 %s736_s24, 4  ;;  %s652_s25 = int_to_ptr.vmem [resolvable:$false] %s651_s25 }
  0x3f   : > { %s653_s26 = scalar_lea.vmem %s652_s25, 1024  ;;  %p654_p3 = scmp.lt.s32.totalorder %s856_s22, %s652_s25 }
  0x40   : > { %p649_p11 = pnand %p647_p8, %p633_p0  ;;  %p655_p7 = scmp.lt.s32.totalorder %s653_s26, %s646_s18 }
  0x42   : > { %p650_p13 = pneg %p649_p11  ;;  %p656_p9 = por %p655_p7, %p654_p3 }
  0x44   : > { %p657_p1 = pnand %p656_p9, %p650_p13 }
  0x46   : > { %660 = shalt.err (!%p657_p1)
}
  0x47   : > { %556 = dma.hbm_to_vmem [thread:$0]  (!%p852_p10), %s850_s27, 512, %s856_s22, %s858_s28, %s734_s4, %s734_s4, %s735_s5  }
  0x48   : > { %p974_p0 = scmp.ne.s32.totalorder %s969_s17, 0 }
  0x49   : > { %p975_p5 = scmp.eq.s32.totalorder (!%p974_p0), %s776_s13, 0 }
  0x4a   : > { %147 = sbr.rel (%p974_p0) target bundleno = 448 (0x1c0), region = 28 }
  0x51   : > { %706 = dma.done.wait (%p975_p5), [#allocation3], 256   ;;  %p976_p2 = pmov %p975_p5 }
  0x52   : > { %s896_s19 = sand.u32 1, %s723_s10   ;;  %p977_p4 = scmp.ne.s32.totalorder %s967_s15, 0 }
  0x53   : > { %708 = vsyncadd (%p976_p2), [#allocation3], 4294967040  ;;  %s491_s23 = sshll.u32 %s896_s19, 5  ;;  %s154_s29 = scalar_lea.sflag [#allocation6], %s896_s19 }
  0x54   : > { %s157_s30 = scalar_lea.vmem [#allocation5], %s491_s23 }
  0x55   : > { %710 = dma.done.wait (%p977_p4), %s154_s29, 512  }
  0x56   : > { %712 = vsyncadd (%p977_p4), %s154_s29, 4294966784  ;;  %v180_v0 = vld [vmem:[#allocation2] sm:$0xff]  ;;  %v214_v1 = vld [vmem:[%s157_s30] sm:$0xff]  ;;  %vm216_vm0 = vcmask 130048   ;;  %s177_s15 = scalar_lea.vmem [#allocation7], %s491_s23  ;;  %s510_s4 = sshll.u32 %s776_s13, 9 }
  0x57   : > { %182 = vxpose.xlu0.b32.start [1/2] (short) (narrow) %v180_v0, 16  ;;  %v215_v2 = vld [vmem:[%s157_s30 + $0x8] sm:$0xff]  ;;  %v495_v3 = vld [vmem:[%s157_s30 + $0x10] sm:$0xff]  ;;  %v496_v4 = vld [vmem:[%s157_s30 + $0x18] sm:$0xff]  ;;  %s396_s17 = sshll.u32 %s177_s15, 4  ;;  %s914_s22 = scalar_lea.hbm %s963_s2, %s510_s4  ;;  %s909_s17 = int_to_ptr.vmem [resolvable:$true] %s396_s17 }
  0x58   : > { %v181_v5 = vld [vmem:[#allocation2 + $0x8] sm:$0xff]  ;;  %v533_v6 = vpack.c.bf16 %v215_v2, %v214_v1  ;;  %v537_v7 = vpack.c.bf16 %v496_v4, %v495_v3  ;;  %s382_s13 = scalar_lea.sflag [#allocation4], %s896_s19  ;;  %s661_s28 = scalar_lea.vmem %s909_s17, 512 }
  0x59   : > { %p662_p10 = scmp.ne.s32.totalorder %s909_s17, %s661_s28  ;;  %s737_s3 = smov [#allocation7]  }
  0x5a   : > { %534 = vmatprep.subr.bf16.mxu0 %v533_v6  ;;  %538 = vmatprep.subr.bf16.mxu1 %v537_v7  ;;  %s665_s6 = sshll.u32 %s737_s3, 4  ;;  %s666_s6 = int_to_ptr.vmem [resolvable:$false] %s665_s6 }
  0x5b   : > { %183 = vxpose.xlu0.b32.end [2/2] (short) (narrow) %v181_v5, 16  ;;  %536 = vmatpush3.bf16.msra.mxu0 %v533_v6  ;;  %p663_p6 = pnand %p662_p10, %p841_p12  ;;  %s667_s7 = scalar_lea.vmem %s666_s6, 1024 }
  0x5c   : > { %540 = vmatpush3.bf16.msra.mxu1 %v537_v7  ;;  %p668_p11 = scmp.lt.s32.totalorder %s909_s17, %s666_s6  ;;  %p669_p13 = scmp.lt.s32.totalorder %s667_s7, %s661_s28 }
  0x5d   : > { %p664_p8 = pneg %p663_p6 }
  0x5e   : > { %p670_p3 = por %p669_p13, %p668_p11 }
  0x60   : > { %p671_p7 = pnand %p670_p3, %p664_p8 }
  0xd7   : > { %v198_v8 = vpop.trf.xlu0 }
  0xd8   : > { %523 = vmatprep.mubr.msk.f32.mxu0 %vm216_vm0, %v198_v8  ;;  %530 = vmatprep.mubr.msk.f32.mxu1 %vm216_vm0, %v198_v8 }
  0xdb   : > { %v199_v9 = vpop.trf.xlu0 }
  0xdc   : > { %524 = vmatmul.mubr.msk.f32.vlgmr.msra.gmra.mrb[0].mxu0 %vm216_vm0, %v199_v9  ;;  %531 = vmatmul.mubr.msk.f32.vlgmr.msra.gmra.mrb[0].mxu1 %vm216_vm0, %v199_v9 }
 0x1af   : > { %v525_v10 = vpop.f32.mrb[0].mxu0  ;;  %v532_v11 = vpop.f32.mrb[0].mxu1 }
 0x1b0   : > { %299 = vst.msk [vmem:[%s177_s15 + $0x8] sm:$0xff] %vm216_vm0, %v525_v10  ;;  %500 = vst.msk [vmem:[%s177_s15 + $0x18] sm:$0xff] %vm216_vm0, %v532_v11  ;;  %v289_v12 = vpop.f32.mrb[1].mxu0  ;;  %v369_v13 = vpop.f32.mrb[1].mxu1 }
 0x1b1   : > { %298 = vst.msk [vmem:[%s177_s15] sm:$0xff] %vm216_vm0, %v289_v12  ;;  %499 = vst.msk [vmem:[%s177_s15 + $0x10] sm:$0xff] %vm216_vm0, %v369_v13 }
 0x1b2   : > { %674 = shalt.err (!%p671_p7)
}
 0x1b3   : > { %s675_s20 = scalar_lea.hbm %s914_s22, 512  ;;  %s679_s25 = scalar_lea.hbm %s963_s2, 2048 }
 0x1b4   : > { %p676_p9 = scmp.ne.s32.totalorder %s914_s22, %s675_s20  ;;  %p680_p5 = scmp.lt.u32.totalorder %s914_s22, %s963_s2 }
 0x1b5   : > { %p681_p2 = scmp.lt.u32.totalorder %s679_s25, %s675_s20  ;;  %p683_p10 = scmp.lt.u32.totalorder %s675_s20, %s914_s22 }
 0x1b6   : > { %p677_p1 = pnand %p676_p9, %p841_p12 }
 0x1b7   : > { %p682_p4 = por %p681_p2, %p680_p5 }
 0x1b8   : > { %p678_p0 = pneg %p677_p1 }
 0x1b9   : > { %p684_p6 = por %p683_p10, %p682_p4 }
 0x1bb   : > { %p685_p8 = pnand %p684_p6, %p678_p0 }
 0x1bd   : > { %688 = shalt.err (!%p685_p8)
}
 0x1be   : > { %s738_s29 = smov 128   ;;  %s739_s30 = smov 8  }
 0x1bf   : > { %547 = dma.vmem_to_hbm [thread:$0]  (%p841_p12), %s909_s17, 512, %s914_s22, %s382_s13, %s738_s29, %s738_s29, %s739_s30  }
 0x1c0 PF: > { %p564_p11 = scmp.ge.s32.totalorder %s731_s12, 2  ;;  %s411_s15 = sand.u32 1, %s719_s9  }
 0x1c1   : > { %p978_p13 = scmp.ne.s32.totalorder %s968_s16, 0  ;;  %s412_s4 = scalar_lea.sflag [#allocation4], %s411_s15 }
 0x1c3   : > { %p558_p3 = pnand %p564_p11, %p978_p13 }
 0x1c5   : > { %714 = dma.done.wait (!%p558_p3), %s412_s4, 512  }
 0x1c6   : > { %716 = vsyncadd (!%p558_p3), %s412_s4, 4294966784  ;;  %p16_p7 = scmp.ge.s32.totalorder %s808_s21, 6   ;;  %s979_s9 = smov %s723_s10 }
 0x1c7   : > { %s980_s10 = smov %s727_s11  ;;  %s981_s11 = smov %s837_s8 }
 0x1c8   : > { %s982_s12 = smov %s808_s21  ;;  %18 = sbr.rel (!%p16_p7) target bundleno = 6 (0x6), region = 80 }
 0x1cf   :  { %417 = vsyncpa [#allocation3], 1 }
 0x1d0   :  { %419 = vsyncpa [#allocation3 + $0x1], 1 }
 0x1d1   :  { %420 = vsyncpa [#allocation6], 1 }
 0x1d2   :  { %422 = vsyncpa [#allocation6 + $0x1], 1 }
 0x1d3   :  { %423 = vsyncpa [#allocation4], 1 }
 0x1d4   :  { %425 = vsyncpa [#allocation4 + $0x1], 1 }

</bundles_post_ra>
